<compile_context>
chip_gen: v7x
topology: tpu7x:2x2x1
jax: 0.10.0
libtpu: 0.0.40
codegen_flags: <defaults>
</compile_context>

<pallas_src>
import functools

import jax
import jax.numpy as jnp
from jax import lax
from jax.experimental import pallas as pl
from jax.experimental.pallas import tpu as pltpu

# Large finite negative: exp(x - m) underflows to exactly 0 for any row that has
# at least one valid key (identical to -inf), but avoids -inf - (-inf) = NaN and
# inf special-casing on the VPU for fully-masked rows.
_MASK_VALUE = -0.7 * float(jnp.finfo(jnp.float32).max)


def _sdpa_kernel(q_ref, k_ref, v_ref, mask_ref, out_ref, attn_ref, *, inv_temperature):
    # Block shapes per grid step:
    #   q: (bb, tq, Dk)  k: (bb, Lk, Dk)  v: (bb, Lk, Dv)  mask: (bb, tq, Lk) int8
    #   out: (bb, tq, Dv)  attn: (bb, tq, Lk)
    # Fold the temperature scale into q (Lq*Dk elements instead of Lq*Lk scores).
    q = q_ref[...] * inv_temperature
    k = k_ref[...]
    v = v_ref[...]

    # scores = q @ k^T: contract the last dims of both operands so the MXU
    # consumes k in transposed-RHS form — no XLU transpose / relayout of k.
    scores = lax.dot_general(
        q, k,
        dimension_numbers=(((2,), (2,)), ((0,), (0,))),
        preferred_element_type=jnp.float32,
    )

    # masked_fill(mask, large_negative)
    scores = jnp.where(mask_ref[...] != 0, _MASK_VALUE, scores)

    # Numerically-stable softmax over the key axis.
    m = jnp.max(scores, axis=-1, keepdims=True)
    p = jnp.exp(scores - m)
    denom = jnp.sum(p, axis=-1, keepdims=True)
    # EUP reciprocal (otherwise-idle slot) + one Newton step (tiny (bb, tq, 1)
    # tensor) to recover full fp32 accuracy; avoids a VALU divide over (tq, Lk).
    inv = pl.reciprocal(denom, approx=True)
    inv = inv * (2.0 - denom * inv)
    attn = p * inv

    attn_ref[...] = attn.astype(attn_ref.dtype)
    # output = attn @ v; cast probs to v.dtype so bf16 inputs run the MXU
    # natively, accumulate in fp32.
    out_ref[...] = lax.dot_general(
        attn.astype(v.dtype), v,
        dimension_numbers=(((2,), (1,)), ((0,), (0,))),
        preferred_element_type=jnp.float32,
    ).astype(out_ref.dtype)


def _pick_block(n, cap, multiple_of=1):
    """Largest divisor of n that is <= cap and a multiple of `multiple_of`;
    falls back to the full extent n (always legal for BlockSpec)."""
    if n <= cap:
        return n
    for d in range(cap, 0, -1):
        if n % d == 0 and d % multiple_of == 0:
            return d
    return n


def scaled_dot_product_attention(q, k, v, mask, temperature, *, block_q=512, block_b=8):
    """Pallas implementation of ScaledDotProductAttention.forward.

    q: (B, Lq, Dk), k: (B, Lk, Dk), v: (B, Lk, Dv), mask: (B, Lq, Lk) (0/1 or bool).
    Returns (output (B, Lq, Dv), attn (B, Lq, Lk)).
    """
    B, Lq, Dk = q.shape
    _, Lk, Dv = v.shape
    assert k.shape == (B, Lk, Dk) and mask.shape[0] == B

    # int8 mask: same element count as the scores tile, 4x less HBM read traffic
    # than int32.
    mask_i8 = (mask != 0).astype(jnp.int8)

    # Lq tile (multiple of 32 keeps int8 mask tiles layout-friendly) and batch
    # block: amortize per-grid-step overhead, bound the double-buffered VMEM
    # working set at long sequences.
    tq = _pick_block(Lq, block_q, 32)
    bb = _pick_block(B, block_b, 1)
    grid = (B // bb, Lq // tq)

    kernel = functools.partial(_sdpa_kernel, inv_temperature=1.0 / float(temperature))

    out_shapes = (
        jax.ShapeDtypeStruct((B, Lq, Dv), q.dtype),
        jax.ShapeDtypeStruct((B, Lq, Lk), q.dtype),
    )

    # Grid = (batch blocks, Lq tiles). The Lq-tile axis is last, so the k/v
    # blocks (whose index map ignores it) stay resident in VMEM across Lq tiles.
    # Note: for best lane utilization callers should keep Dk/Dv at >=128 (e.g.
    # by folding heads into the feature dim); the kernel is correct either way.
    return pl.pallas_call(
        kernel,
        out_shape=out_shapes,
        grid=grid,
        in_specs=[
            pl.BlockSpec((bb, tq, Dk), lambda b, i: (b, i, 0)),
            pl.BlockSpec((bb, Lk, Dk), lambda b, i: (b, 0, 0)),
            pl.BlockSpec((bb, Lk, Dv), lambda b, i: (b, 0, 0)),
            pl.BlockSpec((bb, tq, Lk), lambda b, i: (b, i, 0)),
        ],
        out_specs=(
            pl.BlockSpec((bb, tq, Dv), lambda b, i: (b, i, 0)),
            pl.BlockSpec((bb, tq, Lk), lambda b, i: (b, i, 0)),
        ),
        compiler_params=pltpu.CompilerParams(
            # Both axes are independent -> shardable across v7x's 2 TensorCores.
            dimension_semantics=("parallel", "parallel"),
            # Explicit budget: raises v5e's 16 MiB scoped default, stays safely
            # under v7x's 64 MiB physical VMEM.
            vmem_limit_bytes=48 * 1024 * 1024,
        ),
    )(q, k, v, mask_i8)


def _reference(q, k, v, mask, temperature):
    # Mathematically identical to the PyTorch module (scaling q before the
    # matmul commutes with the contraction); mirroring the kernel's scale
    # placement keeps the comparison apples-to-apples w.r.t. operand rounding.
    attn = jnp.einsum("bqd,bkd->bqk", q * (1.0 / temperature), k)
    attn = jnp.where(mask != 0, -jnp.inf, attn)
    attn = jax.nn.softmax(attn, axis=2)
    out = jnp.einsum("bqk,bkd->bqd", attn, v)
    return out.astype(q.dtype), attn.astype(q.dtype)


def _run_check(B, Lq, Lk, Dk, Dv, tol):
    temperature = float(Dk) ** 0.5
    key = jax.random.PRNGKey(0)
    kq, kk, kv, km = jax.random.split(key, 4)
    q = jax.random.normal(kq, (B, Lq, Dk), dtype=jnp.float32)
    k = jax.random.normal(kk, (B, Lk, Dk), dtype=jnp.float32)
    v = jax.random.normal(kv, (B, Lk, Dv), dtype=jnp.float32)

    # Random boolean mask (1 = masked). Force last key unmasked so no row is
    # fully masked (fully-masked rows are NaN in PyTorch too).
    mask = (jax.random.uniform(km, (B, Lq, Lk)) < 0.3).astype(jnp.int32)
    mask = mask.at[:, :, -1].set(0)

    out, attn = scaled_dot_product_attention(q, k, v, mask, temperature)
    out = jax.block_until_ready(out)
    attn = jax.block_until_ready(attn)

    ref_out, ref_attn = _reference(q, k, v, mask, temperature)
    assert jnp.allclose(out, ref_out, atol=tol, rtol=tol), "output mismatch"
    assert jnp.allclose(attn, ref_attn, atol=tol, rtol=tol), "attn mismatch"


if __name__ == "__main__":
    # Small shape (toy scale implied by the module): single grid step.
    _run_check(B=2, Lq=8, Lk=8, Dk=32, Dv=32, tol=1e-3)
    # Medium shape: exercises the batch-block + Lq-tile grid path (tq=512).
    _run_check(B=2, Lq=1024, Lk=1024, Dk=64, Dv=64, tol=2e-3)
    print("KERNEL_OK")
</pallas_src>

<mosaic_0001>
module attributes {stable_mosaic.version = 11 : i64} {
  func.func @_sdpa_kernel(%arg0: i32, %arg1: i32, %arg2: memref<2x8x32xf32, #tpu.memory_space<vmem>>, %arg3: memref<2x8x32xf32, #tpu.memory_space<vmem>>, %arg4: memref<2x8x32xf32, #tpu.memory_space<vmem>>, %arg5: memref<2x8x8xi8, #tpu.memory_space<vmem>>, %arg6: memref<2x8x32xf32, #tpu.memory_space<vmem>>, %arg7: memref<2x8x8xf32, #tpu.memory_space<vmem>>) attributes {dimension_semantics = [#tpu.dimension_semantics<parallel>, #tpu.dimension_semantics<parallel>], iteration_bounds = array<i64: 1, 1>, scalar_prefetch = 0 : i64, scratch_operands = 0 : i64, tpu.core_type = #tpu.core_type<tc>, window_params = [{transform_indices = @transform_0, window_bounds = array<i64: 2, 8, 32>}, {transform_indices = @transform_1, window_bounds = array<i64: 2, 8, 32>}, {transform_indices = @transform_2, window_bounds = array<i64: 2, 8, 32>}, {transform_indices = @transform_3, window_bounds = array<i64: 2, 8, 8>}, {transform_indices = @transform_4, window_bounds = array<i64: 2, 8, 32>}, {transform_indices = @transform_5, window_bounds = array<i64: 2, 8, 8>}]} {
    %c0 = arith.constant 0 : index
    %c0_0 = arith.constant 0 : index
    %c0_1 = arith.constant 0 : index
    %0 = vector.load %arg2[%c0, %c0_0, %c0_1] : memref<2x8x32xf32, #tpu.memory_space<vmem>>, vector<2x8x32xf32>
    %cst = arith.constant 0.176776692 : f32
    %1 = vector.broadcast %cst : f32 to vector<2x8x32xf32>
    %2 = arith.mulf %0, %1 : vector<2x8x32xf32>
    %c0_2 = arith.constant 0 : index
    %c0_3 = arith.constant 0 : index
    %c0_4 = arith.constant 0 : index
    %3 = vector.load %arg3[%c0_2, %c0_3, %c0_4] : memref<2x8x32xf32, #tpu.memory_space<vmem>>, vector<2x8x32xf32>
    %c0_5 = arith.constant 0 : index
    %c0_6 = arith.constant 0 : index
    %c0_7 = arith.constant 0 : index
    %4 = vector.load %arg4[%c0_5, %c0_6, %c0_7] : memref<2x8x32xf32, #tpu.memory_space<vmem>>, vector<2x8x32xf32>
    %cst_8 = arith.constant dense<0.000000e+00> : vector<2x8x8xf32>
    %5 = tpu.matmul %2, %3, %cst_8 {dimension_numbers = #tpu.dot_dimension_numbers<[2], [2], [1], [1], [0, 0, 0, 1, 1, 1], [0], [0]>} : vector<2x8x32xf32>, vector<2x8x32xf32>, vector<2x8x8xf32> -> vector<2x8x8xf32>
    %c0_9 = arith.constant 0 : index
    %c0_10 = arith.constant 0 : index
    %c0_11 = arith.constant 0 : index
    %6 = vector.load %arg5[%c0_9, %c0_10, %c0_11] : memref<2x8x8xi8, #tpu.memory_space<vmem>>, vector<2x8x8xi8>
    %c0_i8 = arith.constant 0 : i8
    %7 = vector.broadcast %c0_i8 : i8 to vector<2x8x8xi8>
    %8 = arith.cmpi ne, %6, %7 : vector<2x8x8xi8>
    %cst_12 = arith.constant -2.38197633E+38 : f32
    %9 = vector.broadcast %cst_12 : f32 to vector<2x8x8xf32>
    %10 = arith.select %8, %9, %5 : vector<2x8x8xi1>, vector<2x8x8xf32>
    %cst_13 = arith.constant dense<0xFF800000> : vector<2x8xf32>
    %11 = vector.multi_reduction <maximumf>, %10, %cst_13 [2] : vector<2x8x8xf32> to vector<2x8xf32>
    %12 = vector.shape_cast %11 : vector<2x8xf32> to vector<2x8x1xf32>
    %13 = vector.broadcast %12 : vector<2x8x1xf32> to vector<2x8x8xf32>
    %14 = arith.subf %10, %13 : vector<2x8x8xf32>
    %15 = math.exp %14 : vector<2x8x8xf32>
    %cst_14 = arith.constant dense<0.000000e+00> : vector<2x8xf32>
    %16 = vector.multi_reduction <add>, %15, %cst_14 [2] : vector<2x8x8xf32> to vector<2x8xf32>
    %17 = vector.shape_cast %16 : vector<2x8xf32> to vector<2x8x1xf32>
    %18 = tpu.reciprocal %17 {approx = true} : vector<2x8x1xf32> -> vector<2x8x1xf32>
    %19 = arith.mulf %17, %18 : vector<2x8x1xf32>
    %cst_15 = arith.constant 2.000000e+00 : f32
    %20 = vector.broadcast %cst_15 : f32 to vector<2x8x1xf32>
    %21 = arith.subf %20, %19 : vector<2x8x1xf32>
    %22 = arith.mulf %18, %21 : vector<2x8x1xf32>
    %23 = vector.broadcast %22 : vector<2x8x1xf32> to vector<2x8x8xf32>
    %24 = arith.mulf %15, %23 : vector<2x8x8xf32>
    %c0_16 = arith.constant 0 : index
    %c0_17 = arith.constant 0 : index
    %c0_18 = arith.constant 0 : index
    %25 = vector.load %arg7[%c0_16, %c0_17, %c0_18] : memref<2x8x8xf32, #tpu.memory_space<vmem>>, vector<2x8x8xf32>
    tpu.vector_store %arg7[%c0_16, %c0_17, %c0_18], %24 {strides = array<i32>} : memref<2x8x8xf32, #tpu.memory_space<vmem>>, vector<2x8x8xf32>,
    %cst_19 = arith.constant dense<0.000000e+00> : vector<2x8x32xf32>
    %26 = tpu.matmul %24, %4, %cst_19 {dimension_numbers = #tpu.dot_dimension_numbers<[2], [1], [1], [2], [0, 0, 0, 1, 1, 2], [0], [0]>} : vector<2x8x8xf32>, vector<2x8x32xf32>, vector<2x8x32xf32> -> vector<2x8x32xf32>
    %c0_20 = arith.constant 0 : index
    %c0_21 = arith.constant 0 : index
    %c0_22 = arith.constant 0 : index
    %27 = vector.load %arg6[%c0_20, %c0_21, %c0_22] : memref<2x8x32xf32, #tpu.memory_space<vmem>>, vector<2x8x32xf32>
    tpu.vector_store %arg6[%c0_20, %c0_21, %c0_22], %26 {strides = array<i32>} : memref<2x8x32xf32, #tpu.memory_space<vmem>>, vector<2x8x32xf32>,
    return
  }
  func.func @transform_0(%arg0: i32, %arg1: i32) -> (i32, i32, i32) {
    %c0_i32 = arith.constant 0 : i32
    %c0_i32_0 = arith.constant 0 : i32
    return %arg0, %arg1, %c0_i32 : i32, i32, i32
  }
  func.func @transform_1(%arg0: i32, %arg1: i32) -> (i32, i32, i32) {
    %c0_i32 = arith.constant 0 : i32
    %c0_i32_0 = arith.constant 0 : i32
    %c0_i32_1 = arith.constant 0 : i32
    return %arg0, %c0_i32, %c0_i32_0 : i32, i32, i32
  }
  func.func @transform_2(%arg0: i32, %arg1: i32) -> (i32, i32, i32) {
    %c0_i32 = arith.constant 0 : i32
    %c0_i32_0 = arith.constant 0 : i32
    %c0_i32_1 = arith.constant 0 : i32
    return %arg0, %c0_i32, %c0_i32_0 : i32, i32, i32
  }
  func.func @transform_3(%arg0: i32, %arg1: i32) -> (i32, i32, i32) {
    %c0_i32 = arith.constant 0 : i32
    %c0_i32_0 = arith.constant 0 : i32
    return %arg0, %arg1, %c0_i32 : i32, i32, i32
  }
  func.func @transform_4(%arg0: i32, %arg1: i32) -> (i32, i32, i32) {
    %c0_i32 = arith.constant 0 : i32
    %c0_i32_0 = arith.constant 0 : i32
    return %arg0, %arg1, %c0_i32 : i32, i32, i32
  }
  func.func @transform_5(%arg0: i32, %arg1: i32) -> (i32, i32, i32) {
    %c0_i32 = arith.constant 0 : i32
    %c0_i32_0 = arith.constant 0 : i32
    return %arg0, %arg1, %c0_i32 : i32, i32, i32
  }
}

</mosaic_0001>

<bundles_post_ra>
// kernel: tpu_custom_call.1
= control target key start
LH: loop header
LB: loop body
LE: loop exit
PB: predicated region body
PF: predicated region fallthrough
CT: control target
= control target key end

     0   :  { %11 = vsyncpa [#allocation3], 0  ;;  %s766_s0 = inlined_call_operand.hbm [shape: f32[2,8,32], index: 0, kind: input, shape index: {}]   ;;  %s767_s1 = inlined_call_operand.hbm [shape: f32[2,8,32], index: 1, kind: input, shape index: {}]   ;;  %s768_s2 = inlined_call_operand.hbm [shape: f32[2,8,32], index: 2, kind: input, shape index: {}]   ;;  %s769_s3 = inlined_call_operand.vmem [shape: s8[2,8,8], index: 3, kind: input, shape index: {}]   ;;  %s770_s4 = inlined_call_operand.hbm [shape: f32[2,8,32], index: 4, kind: output, shape index: {0}]   ;;  %s771_s5 = inlined_call_operand.hbm [shape: f32[2,8,8], index: 5, kind: output, shape index: {1}]  }
   0x1   :  { %12 = vsyncpa [#allocation6], 0 }
   0x2   :  { %13 = vsyncpa [#allocation4], 0 }
   0x3   :  { %14 = vsyncpa [#allocation10], 0  ;;  %s620_s18 = smov [#allocation5]   ;;  %s621_s20 = smov [#allocation2]  }
   0x4   :  { %s32_s19 = sshll.u32 %s620_s18, 4  ;;  %s20_s21 = sshll.u32 %s621_s20, 4  ;;  %s33_s19 = int_to_ptr.vmem [resolvable:$true] %s32_s19  ;;  %s660_s21 = int_to_ptr.vmem [resolvable:$true] %s20_s21 }
   0x5   :  { %s502_s24 = scalar_lea.hbm %s767_s1, 256 }
   0x6   :  { %p503_p0 = scmp.ne.s32.totalorder %s767_s1, %s502_s24  ;;  %p506_p1 = scmp.lt.u32.totalorder %s502_s24, %s767_s1 }
   0x8   :  { %p508_p2 = pnand %p506_p1, %p503_p0 }
   0xa   :  { %511 = shalt.err (!%p508_p2)
}
   0xb   :  { %s512_s29 = scalar_lea.vmem %s33_s19, 256  ;;  %p517_p4 = scmp.lt.s32.totalorder %s33_s19, %s33_s19 }
   0xc   :  { %p513_p3 = scmp.ne.s32.totalorder %s33_s19, %s512_s29  ;;  %p518_p5 = scmp.lt.s32.totalorder %s512_s29, %s512_s29 }
   0xe   :  { %p519_p6 = por %p518_p5, %p517_p4 }
  0x10   :  { %p520_p7 = pnand %p519_p6, %p513_p3 }
  0x12   :  { %523 = shalt.err (!%p520_p7)
}
  0x13   :  { %s622_s30 = smov 128   ;;  %s623_s6 = smov 8  }
  0x14   :  { %38 = dma.hbm_to_vmem [thread:$0]  %s767_s1, 256, %s33_s19, [#allocation6], %s622_s30, %s622_s30, %s623_s6  }
  0x15   :  { %s524_s11 = scalar_lea.hbm %s766_s0, 256 }
  0x16   :  { %p525_p8 = scmp.ne.s32.totalorder %s766_s0, %s524_s11  ;;  %p528_p9 = scmp.lt.u32.totalorder %s524_s11, %s766_s0 }
  0x18   :  { %p530_p10 = pnand %p528_p9, %p525_p8 }
  0x1a   :  { %533 = shalt.err (!%p530_p10)
}
  0x1b   :  { %s534_s16 = scalar_lea.vmem %s660_s21, 256  ;;  %p539_p12 = scmp.lt.s32.totalorder %s660_s21, %s660_s21 }
  0x1c   :  { %p535_p11 = scmp.ne.s32.totalorder %s660_s21, %s534_s16  ;;  %p540_p13 = scmp.lt.s32.totalorder %s534_s16, %s534_s16 }
  0x1e   :  { %p541_p0 = por %p540_p13, %p539_p12 }
  0x20   :  { %p542_p1 = pnand %p541_p0, %p535_p11 }
  0x22   :  { %545 = shalt.err (!%p542_p1)
}
  0x23   :  { %26 = dma.hbm_to_vmem [thread:$0]  %s766_s0, 256, %s660_s21, [#allocation3], %s622_s30, %s622_s30, %s623_s6  }
  0x24   :  { %s624_s18 = smov [#allocation7]   ;;  %s546_s23 = scalar_lea.hbm %s768_s2, 256 }
  0x25   :  { %s44_s19 = sshll.u32 %s624_s18, 4  ;;  %p547_p2 = scmp.ne.s32.totalorder %s768_s2, %s546_s23  ;;  %s45_s19 = int_to_ptr.vmem [resolvable:$true] %s44_s19 }
  0x26   :  { %p550_p3 = scmp.lt.u32.totalorder %s546_s23, %s768_s2 }
  0x28   :  { %p552_p4 = pnand %p550_p3, %p547_p2 }
  0x2a   :  { %555 = shalt.err (!%p552_p4)
}
  0x2b   :  { %s556_s28 = scalar_lea.vmem %s45_s19, 256  ;;  %p561_p6 = scmp.lt.s32.totalorder %s45_s19, %s45_s19 }
  0x2c   :  { %p557_p5 = scmp.ne.s32.totalorder %s45_s19, %s556_s28  ;;  %p562_p7 = scmp.lt.s32.totalorder %s556_s28, %s556_s28 }
  0x2e   :  { %p563_p8 = por %p562_p7, %p561_p6 }
  0x30   :  { %p564_p9 = pnand %p563_p8, %p557_p5 }
  0x32   :  { %567 = shalt.err (!%p564_p9)
}
  0x33   :  { %50 = dma.hbm_to_vmem [thread:$0]  %s768_s2, 256, %s45_s19, [#allocation6], %s622_s30, %s622_s30, %s623_s6  }
  0x34   :  { %612 = dma.done.wait [#allocation3], 256  }
  0x35   :  { %613 = vsyncadd [#allocation3], 4294967040 }
  0x36   :  { %614 = dma.done.wait [#allocation6], 512  }
  0x37   :  { %615 = vsyncadd [#allocation6], 4294966784  ;;  %v625_v0 = vmov 0.0   ;;  %vm626_vm0 = vmmov 0   ;;  %vm72_vm1 = vcmask 261120   ;;  %v68_v1 = vld [vmem:[#allocation5] sm:$0xff] }
  0x38   :  { %464 = vmatprep.subr.mxu0 %v625_v0  ;;  %466 = vmatprep.mubr.msk.f32.mxu0 %vm626_vm0, %v625_v0  ;;  %v64_v2 = vld [vmem:[#allocation2] sm:$0xff]  ;;  %v69_v3 = vld [vmem:[#allocation5 + $0x8] sm:$0xff]  ;;  %v65_v5 = vld [vmem:[#allocation2 + $0x8] sm:$0xff]  ;;  %v627_v9 = vmov 0   ;;  %vm237_vm6 = vcmask 64512  }
  0x39   :  { %469 = vmatprep.subr.mxu1 %v625_v0  ;;  %471 = vmatprep.mubr.msk.f32.mxu1 %vm626_vm0, %v625_v0  ;;  %v66_v4 = vmul.f32 0.17677669, %v64_v2  ;;  %v67_v6 = vmul.f32 0.17677669, %v65_v5  ;;  %v225_v7 = vld [vmem:[%s769_s3] sm:$0x3] }
  0x3a   :  { %465 = vmatpush3.xpose.msk.msra.mxu0 %vm72_vm1, %v68_v1  ;;  %470 = vmatpush3.xpose.msk.msra.mxu1 %vm72_vm1, %v69_v3  ;;  %v226_v8 = vld [vmem:[%s769_s3 + $0x2] sm:$0x3]  ;;  %vm227_vm2 = vnez %v225_v7  ;;  %v71_v33 = vld [vmem:[#allocation7 + $0x8] sm:$0xff]  ;;  %s628_s3 = smov [#allocation9]  }
  0x3b   :  { %474 = vmatprep.subr.mxu0 %v625_v0  ;;  %479 = vmatprep.subr.mxu1 %v625_v0  ;;  %vm228_vm3 = vnez %v226_v8  ;;  %v229_v10 = vsel %vm227_vm2, 16843009, %v627_v9  ;;  %v70_v32 = vld [vmem:[#allocation7] sm:$0xff]  ;;  %s433_s9 = sshll.u32 %s628_s3, 4  ;;  %s434_s9 = int_to_ptr.vmem [resolvable:$true] %s433_s9 }
  0x3c   :  { %v230_v11 = vsel %vm228_vm3, 16843009, %v627_v9  ;;  %v231_v12 = vunpack.c.0.s8 %v229_v10  ;;  %s568_s10 = scalar_lea.vmem %s434_s9, 256  ;;  %p573_p11 = scmp.lt.s32.totalorder %s434_s9, %s434_s9 }
  0x3d   :  { %467 = vmatmul.mubr.msk.f32.vlgmr.msra.gmra.mrb[0].mxu0 %vm72_vm1, %v66_v4  ;;  %472 = vmatmul.mubr.msk.f32.vlgmr.msra.gmra.mrb[0].mxu1 %vm72_vm1, %v67_v6  ;;  %v232_v13 = vunpack.c.0.s8 %v230_v11  ;;  %p569_p10 = scmp.ne.s32.totalorder %s434_s9, %s568_s10  ;;  %p574_p12 = scmp.lt.s32.totalorder %s568_s10, %s568_s10 }
  0x3e   :  { %476 = vmatprep.mubr.msk.f32.mxu0 %vm626_vm0, %v625_v0  ;;  %481 = vmatprep.mubr.msk.f32.mxu1 %vm626_vm0, %v625_v0  ;;  %vm233_vm4 = vcmp.ne.s32.totalorder %v231_v12, 0 }
  0x3f   :  { %vm234_vm5 = vcmp.ne.s32.totalorder %v232_v13, 0  ;;  %475 = vmatpush3.msra.mxu0 %v70_v32  ;;  %480 = vmatpush3.msra.mxu1 %v71_v33  ;;  %p575_p13 = por %p574_p12, %p573_p11 }
  0x41   :  { %p576_p0 = pnand %p575_p13, %p569_p10 }
 0x110   :  { %v145_v14 = vpop.f32.mrb[0].mxu0  ;;  %v221_v15 = vpop.f32.mrb[0].mxu1 }
 0x111   :  { %v235_v16 = vsel %vm233_vm4, -2.3819763e+38, %v145_v14  ;;  %v468_v17 = vpop.f32.mrb[1].mxu0  ;;  %v236_v18 = vsel %vm234_vm5, -2.3819763e+38, %v221_v15  ;;  %v473_v19 = vpop.f32.mrb[1].mxu1 }
 0x112   :  { %v238_v20 = vsel %vm237_vm6, %v235_v16, -inf  ;;  %v241_v21 = vsel %vm237_vm6, %v236_v18, -inf }
 0x113   :  { %239 = vmax.xlane.f32.xlu0 %v238_v20 }
 0x117   :  { %242 = vmax.xlane.f32.xlu0 %v241_v21 }
 0x1a0   :  { %v240_v22 = vpop.xlane.xlu0 %239 }
 0x1a1   :  { %v244_v23 = vsub.f32 %v235_v16, %v240_v22 }
 0x1a3   :  { %v246_v24 = vmul.f32 1.442695, %v244_v23 }
 0x1a4   :  { %v243_v25 = vpop.xlane.xlu0 %242 }
 0x1a5   :  { %494 = vpow2.f32 %v246_v24  ;;  %v245_v26 = vsub.f32 %v236_v18, %v243_v25 }
 0x1a7   :  { %v248_v27 = vmul.f32 1.442695, %v245_v26 }
 0x1a9   :  { %496 = vpow2.f32 %v248_v27 }
 0x1af   :  { %v495_v28 = vpop.eup %494 }
 0x1b0   :  { %v250_v29 = vsel %vm237_vm6, %v495_v28, 0.0 }
 0x1b1   :  { %251 = vadd.xlane.f32.xlu1 %v250_v29 }
 0x1b3   :  { %v497_v30 = vpop.eup %496 }
 0x1b4   :  { %v253_v31 = vsel %vm237_vm6, %v497_v30, 0.0 }
 0x1b5   :  { %254 = vadd.xlane.f32.xlu1 %v253_v31 }
 0x23e   :  { %v252_v34 = vpop.xlane.xlu1 %251 }
 0x23f   :  { %498 = vrcp.f32 %v252_v34 }
 0x242   :  { %v255_v35 = vpop.xlane.xlu1 %254 }
 0x243   :  { %500 = vrcp.f32 %v255_v35 }
 0x249   :  { %v499_v36 = vpop.eup %498 }
 0x24a   :  { %v258_v37 = vmul.f32 %v499_v36, %v252_v34 }
 0x24c   :  { %v260_v38 = vsub.f32 2.0, %v258_v37 }
 0x24d   :  { %v501_v39 = vpop.eup %500 }
 0x24e   :  { %v262_v40 = vmul.f32 %v499_v36, %v260_v38  ;;  %v259_v41 = vmul.f32 %v501_v39, %v255_v35 }
 0x250   :  { %v264_v42 = vmul.f32 %v495_v28, %v262_v40  ;;  %v261_v43 = vsub.f32 2.0, %v259_v41 }
 0x252   :  { %266 = vst.msk [vmem:[#allocation9] sm:$0xff] %vm237_vm6, %v264_v42  ;;  %v263_v44 = vmul.f32 %v501_v39, %v261_v43  ;;  %477 = vmatmul.mubr.msk.f32.vlgmr.msra.gmra.mrb[2].mxu0 %vm237_vm6, %v264_v42 }
 0x254   :  { %v265_v45 = vmul.f32 %v497_v30, %v263_v44 }
 0x256   :  { %267 = vst.msk [vmem:[#allocation9 + $0x8] sm:$0xff] %vm237_vm6, %v265_v45  ;;  %482 = vmatmul.mubr.msk.f32.vlgmr.msra.gmra.mrb[2].mxu1 %vm237_vm6, %v265_v45 }
 0x257   :  { %579 = shalt.err (!%p576_p0)
}
 0x258   :  { %s580_s13 = scalar_lea.hbm %s771_s5, 256 }
 0x259   :  { %p581_p1 = scmp.ne.s32.totalorder %s771_s5, %s580_s13  ;;  %p584_p2 = scmp.lt.u32.totalorder %s580_s13, %s771_s5 }
 0x25b   :  { %p586_p3 = pnand %p584_p2, %p581_p1 }
 0x25d   :  { %589 = shalt.err (!%p586_p3)
}
 0x25e   :  { %439 = dma.vmem_to_hbm [thread:$0]  %s434_s9, 256, %s771_s5, [#allocation10], %s622_s30, %s622_s30, %s623_s6  }
 0x25f   :  { %s629_s19 = smov [#allocation8]  }
 0x260   :  { %s421_s20 = sshll.u32 %s629_s19, 4  ;;  %s422_s20 = int_to_ptr.vmem [resolvable:$true] %s421_s20 }
 0x261   :  { %s590_s22 = scalar_lea.vmem %s422_s20, 256  ;;  %p595_p5 = scmp.lt.s32.totalorder %s422_s20, %s422_s20 }
 0x262   :  { %p591_p4 = scmp.ne.s32.totalorder %s422_s20, %s590_s22  ;;  %p596_p6 = scmp.lt.s32.totalorder %s590_s22, %s590_s22 }
 0x264   :  { %p597_p7 = por %p596_p6, %p595_p5 }
 0x266   :  { %p598_p8 = pnand %p597_p7, %p591_p4 }
 0x325   :  { %v337_v46 = vpop.f32.mrb[2].mxu0 }
 0x326   :  { %414 = vst.msk [vmem:[#allocation8] sm:$0xff] %vm72_vm1, %v337_v46  ;;  %v478_v47 = vpop.f32.mrb[3].mxu0 }
 0x329   :  { %v410_v48 = vpop.f32.mrb[2].mxu1 }
 0x32a   :  { %415 = vst.msk [vmem:[#allocation8 + $0x8] sm:$0xff] %vm72_vm1, %v410_v48  ;;  %v483_v49 = vpop.f32.mrb[3].mxu1 }
 0x32b   :  { %601 = shalt.err (!%p598_p8)
}
 0x32c   :  { %s602_s24 = scalar_lea.hbm %s770_s4, 256 }
 0x32d   :  { %p603_p9 = scmp.ne.s32.totalorder %s770_s4, %s602_s24  ;;  %p606_p10 = scmp.lt.u32.totalorder %s602_s24, %s770_s4 }
 0x32f   :  { %p608_p11 = pnand %p606_p10, %p603_p9 }
 0x331   :  { %611 = shalt.err (!%p608_p11)
}
 0x332   :  { %427 = dma.vmem_to_hbm [thread:$0]  %s422_s20, 256, %s770_s4, [#allocation4], %s622_s30, %s622_s30, %s623_s6  }
 0x333   :  { %616 = dma.done.wait [#allocation4], 256  }
 0x334   :  { %617 = vsyncadd [#allocation4], 4294967040 }
 0x335   :  { %618 = dma.done.wait [#allocation10], 256  }
 0x336   :  { %619 = vsyncadd [#allocation10], 4294967040 }
 0x337   :  { %446 = vsyncpa [#allocation3], 1 }
 0x338   :  { %447 = vsyncpa [#allocation6], 1 }
 0x339   :  { %448 = vsyncpa [#allocation4], 1 }
 0x33a   :  { %449 = vsyncpa [#allocation10], 1 }

</bundles_post_ra>
